<compile_context>
chip_gen: v6e
topology: v6e:2x2x1
jax: 0.10.0
libtpu: 0.0.40
codegen_flags: <defaults>
</compile_context>

<pallas_src>
import functools

import jax
import jax.numpy as jnp
from jax.experimental import pallas as pl
from jax.experimental.pallas import tpu as pltpu


# ---------------------------------------------------------------------------
# Pallas kernel: forward of the whole block for Nb samples x one L tile
# ---------------------------------------------------------------------------
def _block_kernel(x_ref, wall_ref, ball_ref, w2_ref, b2_ref, o_ref, *, L_true):
    # x_ref   : (Nb, 1, Cin_p, TLp)        TLp = TL + 2*(P + pad2), spatially pre-padded
    # wall_ref: (5*Cout_p, Kmax*Cin_p)     fused input-side conv weights (tap-major, ch-minor)
    # ball_ref: (5*Cout_p, 1)              fused biases (f32)
    # w2_ref  : (Cout_p, K2*Cout_p)        fused conv2 weights
    # b2_ref  : (Cout_p, 1)
    # o_ref   : (1, 1, Cout_p, Nb*TL)      lane-dense output slab, column order (sample, pos)
    Nb, _, Cin_p, TLp = x_ref.shape
    Cout_p = w2_ref.shape[0]
    NbTL = o_ref.shape[-1]
    TL = NbTL // Nb
    K_max = wall_ref.shape[1] // Cin_p
    K2 = w2_ref.shape[1] // Cout_p
    pad2 = (K2 - 1) // 2
    TLm = TL + 2 * pad2                      # mid carries a +/- pad2 halo for conv2
    f32 = jnp.float32
    relu = lambda v: jnp.maximum(v, 0.0)

    x = x_ref[:, 0]                          # (Nb, Cin_p, TLp)

    def lane_cat(pieces):
        return pieces[0] if len(pieces) == 1 else jnp.concatenate(pieces, axis=1)

    # ---- the 5 input-side convs (conv1_3 / conv1_5 / conv1_7 / conv3 / conv4) ----
    if Cin_p < 128:
        # fused im2col: slab[o*Cin_p + ci, b*TLm + j] = x[b, ci, j + o]  -> one MXU matmul
        slab = jnp.concatenate(
            [lane_cat([x[b, :, o:o + TLm] for b in range(Nb)]) for o in range(K_max)],
            axis=0)                                               # (Kmax*Cin_p, Nb*TLm)
        y = jnp.dot(wall_ref[...], slab, preferred_element_type=f32)
    else:
        # contraction already fills the MXU per tap -> per-tap accumulation, no slab copy
        y = jnp.zeros((5 * Cout_p, Nb * TLm), f32)
        for o in range(K_max):
            xo = lane_cat([x[b, :, o:o + TLm] for b in range(Nb)])
            y = y + jnp.dot(wall_ref[:, o * Cin_p:(o + 1) * Cin_p], xo,
                            preferred_element_type=f32)
    y = y + ball_ref[...]                                         # (5*Cout_p, Nb*TLm) f32

    mid = (relu(y[0 * Cout_p:1 * Cout_p]) + relu(y[1 * Cout_p:2 * Cout_p])
           + relu(y[2 * Cout_p:3 * Cout_p]))                      # branch sum (f32)
    yskip = y[3 * Cout_p:4 * Cout_p] + y[4 * Cout_p:5 * Cout_p]   # conv3 + conv4 (f32)

    # ---- conv2 zero-padding semantics: mid is zero outside the true sequence [0, L_true) ----
    jloc = jnp.tile(jax.lax.broadcasted_iota(jnp.int32, (1, TLm), 1), (1, Nb))
    pos = jloc + (pl.program_id(1) * TL - pad2)
    mid = jnp.where((pos >= 0) & (pos < L_true), mid, 0.0)

    # ---- conv2 as a second fused matmul over a register-level im2col of mid ----
    mid_c = mid.astype(w2_ref.dtype)
    slab2 = jnp.concatenate(
        [lane_cat([mid_c[:, b * TLm + k: b * TLm + k + TL] for b in range(Nb)])
         for k in range(K2)], axis=0)                             # (K2*Cout_p, Nb*TL)
    out2 = jnp.dot(w2_ref[...], slab2, preferred_element_type=f32) + b2_ref[...]

    # ---- residual skip (central TL columns of conv3+conv4) + final ReLU ----
    skip = lane_cat([yskip[:, b * TLm + pad2: b * TLm + pad2 + TL] for b in range(Nb)])
    o_ref[0, 0] = relu(out2 + skip).astype(o_ref.dtype)           # lane-dense full-slab store


# ---------------------------------------------------------------------------
# Tile / footprint chooser (keeps the resident set small enough for v7x 64 MiB VMEM)
# ---------------------------------------------------------------------------
def _choose_tiling(N, L, Cin_p, Cout_p, K_max, K2, itemsize,
                   lane_target=512, tl_max=512, vmem_budget=20 * 2**20):
    pad2 = (K2 - 1) // 2
    P_total = (K_max - 1) // 2 + pad2

    def footprint(Nb, TL):
        TLm, TLp = TL + 2 * pad2, TL + 2 * P_total
        x_t = 2 * Nb * Cin_p * TLp * itemsize                       # double-buffered input tile
        o_t = 2 * Cout_p * Nb * TL * 4                              # double-buffered output tile
        cst = (5 * Cout_p * K_max * Cin_p + Cout_p * K2 * Cout_p) * itemsize + 6 * Cout_p * 4
        tmp = (K_max * Cin_p * Nb * TLm * itemsize                  # im2col slab
               + 7 * Cout_p * Nb * TLm * 4                          # y + mid + skip
               + K2 * Cout_p * Nb * TL * itemsize                   # conv2 slab
               + 2 * Cout_p * Nb * TL * 4)                          # out2 + store temp
        return x_t + o_t + cst + tmp * 3 // 2                       # 1.5x margin on temporaries

    TL = L if L <= tl_max else tl_max
    Nb = max(1, min(N, -(-lane_target // TL)))                      # target Nb*TL >= lane_target
    while Nb > 1 and footprint(Nb, TL) > vmem_budget:
        Nb -= 1
    while TL > 128 and footprint(Nb, TL) > vmem_budget:
        TL = max(128, TL - 128)
    return Nb, TL, footprint(Nb, TL)


# ---------------------------------------------------------------------------
# JAX wrapper: layout / padding / fused-weight prep (trace-time glue)
# ---------------------------------------------------------------------------
def resnet_basic_block0(x_ncw, params, kernel_size, kernel_size2,
                        compute_dtype=jnp.bfloat16):
    """x_ncw: (N, C_in, L) float32, PyTorch NCW layout.  Returns (N, C_out, L) float32.

    MXU inputs are cast to `compute_dtype` (bf16 default for v5e/v6e/v7x); accumulation and
    all elementwise math stay f32.  Pass compute_dtype=jnp.float32 for bit-accurate checks.
    """
    assert kernel_size % 2 == 1 and kernel_size2 % 2 == 1, "odd kernel sizes expected"
    N, Cin, L = x_ncw.shape
    k3, k5, k7 = kernel_size - 2, kernel_size, kernel_size + 2
    K_max, K2 = k7, kernel_size2
    P, pad2 = (k7 - 1) // 2, (K2 - 1) // 2
    P_total = P + pad2                         # conv halo + conv2 reach

    Cout = params["conv2_w"].shape[0]
    Cin_p = -(-Cin // 8) * 8                   # sublane-align im2col row blocks
    Cout_p = -(-Cout // 8) * 8                 # sublane-align branch slices / conv2 slab
    itemsize = jnp.dtype(compute_dtype).itemsize

    Nb, TL, fp_bytes = _choose_tiling(N, L, Cin_p, Cout_p, K_max, K2, itemsize)
    L_tiles = -(-L // TL)
    L_padq = L_tiles * TL
    N_groups = -(-N // Nb)
    N_pad = N_groups * Nb
    TLp = TL + 2 * P_total

    # ---- input pack: channel pad, halo pad, right-pad L, split into overlapping L tiles ----
    # TODO(synk): fold this pad/repack into the kernel via a masked manual DMA to save one HBM
    # round trip of x (matters most on v5e's ~0.8 TB/s HBM).
    x_fp = jnp.pad(x_ncw, ((0, N_pad - N), (0, Cin_p - Cin),
                           (P_total, P_total + L_padq - L))).astype(compute_dtype)
    if L_tiles == 1:
        x_tiles = x_fp[:, None]                                        # (N_pad, 1, Cin_p, TLp)
    else:
        x_tiles = jnp.stack([x_fp[:, :, t * TL: t * TL + TLp]
                             for t in range(L_tiles)], axis=1)          # halo-duplicated tiles

    # ---- fuse the 5 input-side convs into one weight matrix -------------------------------
    # W_all[c*Cout_p + co, o*Cin_p + ci] = w_c[co, ci, o - (P - pad_c)]  (else 0)
    conv_list = [("conv1_3", k3), ("conv1_5", k5), ("conv1_7", k7),
                 ("conv3", k5), ("conv4", 1)]
    w_blocks, b_blocks = [], []
    for name, K in conv_list:
        w = params[name + "_w"]                                 # (Cout, Cin, K)
        pad_c = (K - 1) // 2
        start = P - pad_c
        wt = jnp.transpose(w, (0, 2, 1))                        # (Cout, K, Cin)
        wt = jnp.pad(wt, ((0, Cout_p - Cout),
                          (start, K_max - K - start),
                          (0, Cin_p - Cin)))
        w_blocks.append(wt.reshape(Cout_p, K_max * Cin_p))
        b_blocks.append(jnp.pad(params[name + "_b"], (0, Cout_p - Cout)))
    W_all = jnp.concatenate(w_blocks, axis=0).astype(compute_dtype)     # (5*Cout_p, Kmax*Cin_p)
    B_all = jnp.concatenate(b_blocks)[:, None].astype(jnp.float32)      # (5*Cout_p, 1)

    # conv2 fused weight: W2[co, k*Cout_p + ci] = w2[co, ci, k]
    w2 = params["conv2_w"]                                              # (Cout, Cout, K2)
    W2 = jnp.pad(jnp.transpose(w2, (0, 2, 1)),
                 ((0, Cout_p - Cout), (0, 0), (0, Cout_p - Cout)))
    W2 = W2.reshape(Cout_p, K2 * Cout_p).astype(compute_dtype)
    B2 = jnp.pad(params["conv2_b"], (0, Cout_p - Cout))[:, None].astype(jnp.float32)

    # ---- BlockSpecs --------------------------------------------------------------------
    def const_spec(arr):
        nd = arr.ndim
        idx = lambda g, t, _nd=nd: (0,) * _nd
        try:  # single-buffer the constants (their index_map never changes)
            return pl.BlockSpec(arr.shape, idx, pipeline_mode=pl.Buffered(1))
        except (TypeError, AttributeError):
            return pl.BlockSpec(arr.shape, idx)

    vmem_limit = int(min(48 * 2**20, max(32 * 2**20, fp_bytes * 5 // 4 + (2 << 20))))

    out = pl.pallas_call(
        functools.partial(_block_kernel, L_true=L),
        out_shape=jax.ShapeDtypeStruct((N_groups, L_tiles, Cout_p, Nb * TL), jnp.float32),
        grid=(N_groups, L_tiles),
        in_specs=[
            pl.BlockSpec((Nb, 1, Cin_p, TLp), lambda g, t: (g, t, 0, 0)),   # x tiles
            const_spec(W_all), const_spec(B_all), const_spec(W2), const_spec(B2),
        ],
        out_specs=pl.BlockSpec((1, 1, Cout_p, Nb * TL), lambda g, t: (g, t, 0, 0)),
        compiler_params=pltpu.CompilerParams(
            dimension_semantics=("parallel", "parallel"),
            vmem_limit_bytes=vmem_limit),
    )(x_tiles, W_all, B_all, W2, B2)

    # un-pack the lane-dense slabs back to NCW (pure layout plumbing)
    out = out.reshape(N_groups, L_tiles, Cout_p, Nb, TL)
    out = jnp.transpose(out, (0, 3, 2, 1, 4)).reshape(N_pad, Cout_p, L_padq)
    return out[:N, :Cout, :L]


# ---------------------------------------------------------------------------
# Deterministic parameter init (PyTorch-default-style uniform, synthetic)
# ---------------------------------------------------------------------------
def init_params(key, in_channels, out_channels, kernel_size, kernel_size2):
    specs = {
        "conv1_3": (out_channels, in_channels, kernel_size - 2),
        "conv1_5": (out_channels, in_channels, kernel_size),
        "conv1_7": (out_channels, in_channels, kernel_size + 2),
        "conv2":   (out_channels, out_channels, kernel_size2),
        "conv3":   (out_channels, in_channels, kernel_size),
        "conv4":   (out_channels, in_channels, 1),
    }
    params = {}
    for name, (co, ci, k) in specs.items():
        key, kw, kb = jax.random.split(key, 3)
        bound = 1.0 / jnp.sqrt(ci * k)
        params[name + "_w"] = jax.random.uniform(kw, (co, ci, k), jnp.float32, -bound, bound)
        params[name + "_b"] = jax.random.uniform(kb, (co,), jnp.float32, -bound, bound)
    return params


# ---------------------------------------------------------------------------
# Pure-JAX reference (lax conv) for a correctness check
# ---------------------------------------------------------------------------
def _conv1d_ref(x_ncw, w, b, pad):
    y = jax.lax.conv_general_dilated(
        x_ncw, w, window_strides=(1,), padding=[(pad, pad)],
        dimension_numbers=("NCH", "OIH", "NCH"))
    return y + b[None, :, None]


def reference_forward(x, p, kernel_size, kernel_size2):
    k3, k5, k7 = kernel_size - 2, kernel_size, kernel_size + 2
    o3 = jax.nn.relu(_conv1d_ref(x, p["conv1_3_w"], p["conv1_3_b"], (k3 - 1) // 2))
    o5 = jax.nn.relu(_conv1d_ref(x, p["conv1_5_w"], p["conv1_5_b"], (k5 - 1) // 2))
    o7 = jax.nn.relu(_conv1d_ref(x, p["conv1_7_w"], p["conv1_7_b"], (k7 - 1) // 2))
    out = o3 + o5 + o7
    out = _conv1d_ref(out, p["conv2_w"], p["conv2_b"], (kernel_size2 - 1) // 2)
    out = out + _conv1d_ref(x, p["conv3_w"], p["conv3_b"], (kernel_size - 1) // 2)
    out = out + _conv1d_ref(x, p["conv4_w"], p["conv4_b"], 0)
    return jax.nn.relu(out)


if __name__ == "__main__":
    N, Cin, Cout, L = 2, 4, 8, 16
    kernel_size, kernel_size2 = 5, 3

    key = jax.random.PRNGKey(0)
    key, kx, kp = jax.random.split(key, 3)
    x = jax.random.normal(kx, (N, Cin, L), jnp.float32)
    params = init_params(kp, Cin, Cout, kernel_size, kernel_size2)

    ref = reference_forward(x, params, kernel_size, kernel_size2)

    # strict check on the f32 MXU path
    run_f32 = jax.jit(functools.partial(resnet_basic_block0, kernel_size=kernel_size,
                                        kernel_size2=kernel_size2,
                                        compute_dtype=jnp.float32))
    out_f32 = jax.block_until_ready(run_f32(x, params))
    assert out_f32.shape == (N, Cout, L)
    assert float(jnp.max(jnp.abs(out_f32 - ref))) < 1e-4

    # default bf16 MXU path (f32 accumulation) — loose tolerance
    run_bf16 = jax.jit(functools.partial(resnet_basic_block0, kernel_size=kernel_size,
                                         kernel_size2=kernel_size2))
    out_bf16 = jax.block_until_ready(run_bf16(x, params))
    assert out_bf16.shape == (N, Cout, L)
    assert float(jnp.max(jnp.abs(out_bf16 - ref))) < 0.25

    print("KERNEL_OK")
</pallas_src>

<mosaic_0001>
module attributes {stable_mosaic.version = 11 : i64} {
  func.func @_block_kernel(%arg0: i32, %arg1: i32, %arg2: memref<2x1x8x24xf32, #tpu.memory_space<vmem>>, %arg3: memref<40x56xf32, #tpu.memory_space<vmem>>, %arg4: memref<40x1xf32, #tpu.memory_space<vmem>>, %arg5: memref<8x24xf32, #tpu.memory_space<vmem>>, %arg6: memref<8x1xf32, #tpu.memory_space<vmem>>, %arg7: memref<1x1x8x32xf32, #tpu.memory_space<vmem>>) attributes {dimension_semantics = [#tpu.dimension_semantics<parallel>, #tpu.dimension_semantics<parallel>], iteration_bounds = array<i64: 1, 1>, scalar_prefetch = 0 : i64, scratch_operands = 0 : i64, tpu.core_type = #tpu.core_type<tc>, window_params = [{transform_indices = @transform_0, window_bounds = array<i64: 2, 1, 8, 24>}, {pipeline_mode = #tpu.pipeline_mode<synchronous>, transform_indices = @transform_1, window_bounds = array<i64: 40, 56>}, {pipeline_mode = #tpu.pipeline_mode<synchronous>, transform_indices = @transform_2, window_bounds = array<i64: 40, 1>}, {pipeline_mode = #tpu.pipeline_mode<synchronous>, transform_indices = @transform_3, window_bounds = array<i64: 8, 24>}, {pipeline_mode = #tpu.pipeline_mode<synchronous>, transform_indices = @transform_4, window_bounds = array<i64: 8, 1>}, {transform_indices = @transform_5, window_bounds = array<i64: 1, 1, 8, 32>}]} {
    %c0 = arith.constant 0 : index
    %c0_0 = arith.constant 0 : index
    %c0_1 = arith.constant 0 : index
    %c0_2 = arith.constant 0 : index
    %0 = vector.load %arg2[%c0, %c0_0, %c0_1, %c0_2] : memref<2x1x8x24xf32, #tpu.memory_space<vmem>>, vector<2x1x8x24xf32>
    %1 = vector.shape_cast %0 : vector<2x1x8x24xf32> to vector<2x8x24xf32>
    %2 = vector.extract_strided_slice %1 {offsets = [0, 0, 0], sizes = [1, 8, 18], strides = [1, 1, 1]} : vector<2x8x24xf32> to vector<1x8x18xf32>
    %3 = vector.shape_cast %2 : vector<1x8x18xf32> to vector<8x18xf32>
    %4 = vector.extract_strided_slice %1 {offsets = [1, 0, 0], sizes = [1, 8, 18], strides = [1, 1, 1]} : vector<2x8x24xf32> to vector<1x8x18xf32>
    %5 = vector.shape_cast %4 : vector<1x8x18xf32> to vector<8x18xf32>
    %6 = tpu.concatenate %3, %5 in 1 : vector<8x18xf32>, vector<8x18xf32> -> vector<8x36xf32>
    %7 = vector.extract_strided_slice %1 {offsets = [0, 0, 1], sizes = [1, 8, 18], strides = [1, 1, 1]} : vector<2x8x24xf32> to vector<1x8x18xf32>
    %8 = vector.shape_cast %7 : vector<1x8x18xf32> to vector<8x18xf32>
    %9 = vector.extract_strided_slice %1 {offsets = [1, 0, 1], sizes = [1, 8, 18], strides = [1, 1, 1]} : vector<2x8x24xf32> to vector<1x8x18xf32>
    %10 = vector.shape_cast %9 : vector<1x8x18xf32> to vector<8x18xf32>
    %11 = tpu.concatenate %8, %10 in 1 : vector<8x18xf32>, vector<8x18xf32> -> vector<8x36xf32>
    %12 = vector.extract_strided_slice %1 {offsets = [0, 0, 2], sizes = [1, 8, 18], strides = [1, 1, 1]} : vector<2x8x24xf32> to vector<1x8x18xf32>
    %13 = vector.shape_cast %12 : vector<1x8x18xf32> to vector<8x18xf32>
    %14 = vector.extract_strided_slice %1 {offsets = [1, 0, 2], sizes = [1, 8, 18], strides = [1, 1, 1]} : vector<2x8x24xf32> to vector<1x8x18xf32>
    %15 = vector.shape_cast %14 : vector<1x8x18xf32> to vector<8x18xf32>
    %16 = tpu.concatenate %13, %15 in 1 : vector<8x18xf32>, vector<8x18xf32> -> vector<8x36xf32>
    %17 = vector.extract_strided_slice %1 {offsets = [0, 0, 3], sizes = [1, 8, 18], strides = [1, 1, 1]} : vector<2x8x24xf32> to vector<1x8x18xf32>
    %18 = vector.shape_cast %17 : vector<1x8x18xf32> to vector<8x18xf32>
    %19 = vector.extract_strided_slice %1 {offsets = [1, 0, 3], sizes = [1, 8, 18], strides = [1, 1, 1]} : vector<2x8x24xf32> to vector<1x8x18xf32>
    %20 = vector.shape_cast %19 : vector<1x8x18xf32> to vector<8x18xf32>
    %21 = tpu.concatenate %18, %20 in 1 : vector<8x18xf32>, vector<8x18xf32> -> vector<8x36xf32>
    %22 = vector.extract_strided_slice %1 {offsets = [0, 0, 4], sizes = [1, 8, 18], strides = [1, 1, 1]} : vector<2x8x24xf32> to vector<1x8x18xf32>
    %23 = vector.shape_cast %22 : vector<1x8x18xf32> to vector<8x18xf32>
    %24 = vector.extract_strided_slice %1 {offsets = [1, 0, 4], sizes = [1, 8, 18], strides = [1, 1, 1]} : vector<2x8x24xf32> to vector<1x8x18xf32>
    %25 = vector.shape_cast %24 : vector<1x8x18xf32> to vector<8x18xf32>
    %26 = tpu.concatenate %23, %25 in 1 : vector<8x18xf32>, vector<8x18xf32> -> vector<8x36xf32>
    %27 = vector.extract_strided_slice %1 {offsets = [0, 0, 5], sizes = [1, 8, 18], strides = [1, 1, 1]} : vector<2x8x24xf32> to vector<1x8x18xf32>
    %28 = vector.shape_cast %27 : vector<1x8x18xf32> to vector<8x18xf32>
    %29 = vector.extract_strided_slice %1 {offsets = [1, 0, 5], sizes = [1, 8, 18], strides = [1, 1, 1]} : vector<2x8x24xf32> to vector<1x8x18xf32>
    %30 = vector.shape_cast %29 : vector<1x8x18xf32> to vector<8x18xf32>
    %31 = tpu.concatenate %28, %30 in 1 : vector<8x18xf32>, vector<8x18xf32> -> vector<8x36xf32>
    %32 = vector.extract_strided_slice %1 {offsets = [0, 0, 6], sizes = [1, 8, 18], strides = [1, 1, 1]} : vector<2x8x24xf32> to vector<1x8x18xf32>
    %33 = vector.shape_cast %32 : vector<1x8x18xf32> to vector<8x18xf32>
    %34 = vector.extract_strided_slice %1 {offsets = [1, 0, 6], sizes = [1, 8, 18], strides = [1, 1, 1]} : vector<2x8x24xf32> to vector<1x8x18xf32>
    %35 = vector.shape_cast %34 : vector<1x8x18xf32> to vector<8x18xf32>
    %36 = tpu.concatenate %33, %35 in 1 : vector<8x18xf32>, vector<8x18xf32> -> vector<8x36xf32>
    %37 = tpu.concatenate %6, %11, %16, %21, %26, %31, %36 in 0 : vector<8x36xf32>, vector<8x36xf32>, vector<8x36xf32>, vector<8x36xf32>, vector<8x36xf32>, vector<8x36xf32>, vector<8x36xf32> -> vector<56x36xf32>
    %c0_3 = arith.constant 0 : index
    %c0_4 = arith.constant 0 : index
    %38 = vector.load %arg3[%c0_3, %c0_4] : memref<40x56xf32, #tpu.memory_space<vmem>>, vector<40x56xf32>
    %cst = arith.constant dense<0.000000e+00> : vector<40x36xf32>
    %39 = tpu.matmul %38, %37, %cst {dimension_numbers = #tpu.dot_dimension_numbers<[1], [0], [0], [1], [0, 0, 1, 1], [], []>} : vector<40x56xf32>, vector<56x36xf32>, vector<40x36xf32> -> vector<40x36xf32>
    %c0_5 = arith.constant 0 : index
    %c0_6 = arith.constant 0 : index
    %40 = vector.load %arg4[%c0_5, %c0_6] : memref<40x1xf32, #tpu.memory_space<vmem>>, vector<40x1xf32>
    %41 = vector.broadcast %40 : vector<40x1xf32> to vector<40x36xf32>
    %42 = arith.addf %39, %41 : vector<40x36xf32>
    %43 = vector.extract_strided_slice %42 {offsets = [0, 0], sizes = [8, 36], strides = [1, 1]} : vector<40x36xf32> to vector<8x36xf32>
    %cst_7 = arith.constant 0.000000e+00 : f32
    %44 = vector.broadcast %cst_7 : f32 to vector<8x36xf32>
    %45 = arith.maximumf %43, %44 : vector<8x36xf32>
    %46 = vector.extract_strided_slice %42 {offsets = [8, 0], sizes = [8, 36], strides = [1, 1]} : vector<40x36xf32> to vector<8x36xf32>
    %cst_8 = arith.constant 0.000000e+00 : f32
    %47 = vector.broadcast %cst_8 : f32 to vector<8x36xf32>
    %48 = arith.maximumf %46, %47 : vector<8x36xf32>
    %49 = arith.addf %45, %48 : vector<8x36xf32>
    %50 = vector.extract_strided_slice %42 {offsets = [16, 0], sizes = [8, 36], strides = [1, 1]} : vector<40x36xf32> to vector<8x36xf32>
    %cst_9 = arith.constant 0.000000e+00 : f32
    %51 = vector.broadcast %cst_9 : f32 to vector<8x36xf32>
    %52 = arith.maximumf %50, %51 : vector<8x36xf32>
    %53 = arith.addf %49, %52 : vector<8x36xf32>
    %54 = vector.extract_strided_slice %42 {offsets = [24, 0], sizes = [8, 36], strides = [1, 1]} : vector<40x36xf32> to vector<8x36xf32>
    %55 = vector.extract_strided_slice %42 {offsets = [32, 0], sizes = [8, 36], strides = [1, 1]} : vector<40x36xf32> to vector<8x36xf32>
    %56 = arith.addf %54, %55 : vector<8x36xf32>
    %57 = tpu.iota {dimensions = array<i32: 1>} : vector<1x18xi32>
    %58 = tpu.concatenate %57, %57 in 1 : vector<1x18xi32>, vector<1x18xi32> -> vector<1x36xi32>
    %c16_i32 = arith.constant 16 : i32
    %59 = arith.muli %arg1, %c16_i32 : i32
    %c1_i32 = arith.constant 1 : i32
    %60 = arith.subi %59, %c1_i32 : i32
    %61 = vector.broadcast %60 : i32 to vector<1x36xi32>
    %62 = arith.addi %58, %61 : vector<1x36xi32>
    %c0_i32 = arith.constant 0 : i32
    %63 = vector.broadcast %c0_i32 : i32 to vector<1x36xi32>
    %64 = arith.cmpi sge, %62, %63 : vector<1x36xi32>
    %c16_i32_10 = arith.constant 16 : i32
    %65 = vector.broadcast %c16_i32_10 : i32 to vector<1x36xi32>
    %66 = arith.cmpi slt, %62, %65 : vector<1x36xi32>
    %67 = arith.andi %64, %66 : vector<1x36xi1>
    %cst_11 = arith.constant 0.000000e+00 : f32
    %68 = vector.shape_cast %67 : vector<1x36xi1> to vector<1x36xi1>
    %69 = vector.broadcast %68 : vector<1x36xi1> to vector<8x36xi1>
    %70 = vector.broadcast %cst_11 : f32 to vector<8x36xf32>
    %71 = arith.select %69, %53, %70 : vector<8x36xi1>, vector<8x36xf32>
    %72 = vector.extract_strided_slice %71 {offsets = [0, 0], sizes = [8, 16], strides = [1, 1]} : vector<8x36xf32> to vector<8x16xf32>
    %73 = vector.extract_strided_slice %71 {offsets = [0, 18], sizes = [8, 16], strides = [1, 1]} : vector<8x36xf32> to vector<8x16xf32>
    %74 = tpu.concatenate %72, %73 in 1 : vector<8x16xf32>, vector<8x16xf32> -> vector<8x32xf32>
    %75 = vector.extract_strided_slice %71 {offsets = [0, 1], sizes = [8, 16], strides = [1, 1]} : vector<8x36xf32> to vector<8x16xf32>
    %76 = vector.extract_strided_slice %71 {offsets = [0, 19], sizes = [8, 16], strides = [1, 1]} : vector<8x36xf32> to vector<8x16xf32>
    %77 = tpu.concatenate %75, %76 in 1 : vector<8x16xf32>, vector<8x16xf32> -> vector<8x32xf32>
    %78 = vector.extract_strided_slice %71 {offsets = [0, 2], sizes = [8, 16], strides = [1, 1]} : vector<8x36xf32> to vector<8x16xf32>
    %79 = vector.extract_strided_slice %71 {offsets = [0, 20], sizes = [8, 16], strides = [1, 1]} : vector<8x36xf32> to vector<8x16xf32>
    %80 = tpu.concatenate %78, %79 in 1 : vector<8x16xf32>, vector<8x16xf32> -> vector<8x32xf32>
    %81 = tpu.concatenate %74, %77, %80 in 0 : vector<8x32xf32>, vector<8x32xf32>, vector<8x32xf32> -> vector<24x32xf32>
    %c0_12 = arith.constant 0 : index
    %c0_13 = arith.constant 0 : index
    %82 = vector.load %arg5[%c0_12, %c0_13] : memref<8x24xf32, #tpu.memory_space<vmem>>, vector<8x24xf32>
    %cst_14 = arith.constant dense<0.000000e+00> : vector<8x32xf32>
    %83 = tpu.matmul %82, %81, %cst_14 {dimension_numbers = #tpu.dot_dimension_numbers<[1], [0], [0], [1], [0, 0, 1, 1], [], []>} : vector<8x24xf32>, vector<24x32xf32>, vector<8x32xf32> -> vector<8x32xf32>
    %c0_15 = arith.constant 0 : index
    %c0_16 = arith.constant 0 : index
    %84 = vector.load %arg6[%c0_15, %c0_16] : memref<8x1xf32, #tpu.memory_space<vmem>>, vector<8x1xf32>
    %85 = vector.broadcast %84 : vector<8x1xf32> to vector<8x32xf32>
    %86 = arith.addf %83, %85 : vector<8x32xf32>
    %87 = vector.extract_strided_slice %56 {offsets = [0, 1], sizes = [8, 16], strides = [1, 1]} : vector<8x36xf32> to vector<8x16xf32>
    %88 = vector.extract_strided_slice %56 {offsets = [0, 19], sizes = [8, 16], strides = [1, 1]} : vector<8x36xf32> to vector<8x16xf32>
    %89 = tpu.concatenate %87, %88 in 1 : vector<8x16xf32>, vector<8x16xf32> -> vector<8x32xf32>
    %90 = arith.addf %86, %89 : vector<8x32xf32>
    %cst_17 = arith.constant 0.000000e+00 : f32
    %91 = vector.broadcast %cst_17 : f32 to vector<8x32xf32>
    %92 = arith.maximumf %90, %91 : vector<8x32xf32>
    %c0_18 = arith.constant 0 : index
    %c0_19 = arith.constant 0 : index
    %c0_20 = arith.constant 0 : index
    %c0_21 = arith.constant 0 : index
    %93 = vector.load %arg7[%c0_18, %c0_19, %c0_20, %c0_21] : memref<1x1x8x32xf32, #tpu.memory_space<vmem>>, vector<1x1x8x32xf32>
    %94 = vector.shape_cast %93 : vector<1x1x8x32xf32> to vector<8x32xf32>
    %95 = vector.shape_cast %92 : vector<8x32xf32> to vector<1x1x8x32xf32>
    tpu.vector_store %arg7[%c0_18, %c0_19, %c0_20, %c0_21], %95 {strides = array<i32>} : memref<1x1x8x32xf32, #tpu.memory_space<vmem>>, vector<1x1x8x32xf32>,
    return
  }
  func.func @transform_0(%arg0: i32, %arg1: i32) -> (i32, i32, i32, i32) {
    %c0_i32 = arith.constant 0 : i32
    %c0_i32_0 = arith.constant 0 : i32
    %c0_i32_1 = arith.constant 0 : i32
    return %arg0, %arg1, %c0_i32, %c0_i32_0 : i32, i32, i32, i32
  }
  func.func @transform_1(%arg0: i32, %arg1: i32) -> (i32, i32) {
    %c0_i32 = arith.constant 0 : i32
    %c0_i32_0 = arith.constant 0 : i32
    %c0_i32_1 = arith.constant 0 : i32
    return %c0_i32, %c0_i32_0 : i32, i32
  }
  func.func @transform_2(%arg0: i32, %arg1: i32) -> (i32, i32) {
    %c0_i32 = arith.constant 0 : i32
    %c0_i32_0 = arith.constant 0 : i32
    %c0_i32_1 = arith.constant 0 : i32
    return %c0_i32, %c0_i32_0 : i32, i32
  }
  func.func @transform_3(%arg0: i32, %arg1: i32) -> (i32, i32) {
    %c0_i32 = arith.constant 0 : i32
    %c0_i32_0 = arith.constant 0 : i32
    %c0_i32_1 = arith.constant 0 : i32
    return %c0_i32, %c0_i32_0 : i32, i32
  }
  func.func @transform_4(%arg0: i32, %arg1: i32) -> (i32, i32) {
    %c0_i32 = arith.constant 0 : i32
    %c0_i32_0 = arith.constant 0 : i32
    %c0_i32_1 = arith.constant 0 : i32
    return %c0_i32, %c0_i32_0 : i32, i32
  }
  func.func @transform_5(%arg0: i32, %arg1: i32) -> (i32, i32, i32, i32) {
    %c0_i32 = arith.constant 0 : i32
    %c0_i32_0 = arith.constant 0 : i32
    %c0_i32_1 = arith.constant 0 : i32
    return %arg0, %arg1, %c0_i32, %c0_i32_0 : i32, i32, i32, i32
  }
}

</mosaic_0001>

<bundles_post_ra>
// kernel: resnet_basic_block0.1
= control target key start
LH: loop header
LB: loop body
LE: loop exit
PB: predicated region body
PF: predicated region fallthrough
CT: control target
= control target key end

     0   :  { %v443_v1 = vmov 0.0   ;;  %s444_s20 = smov 123   ;;  %s445_s21 = smov 122   ;;  %vm452_vm0 = vmmov 0   ;;  %v457_v3 = vmov 0   ;;  %v218_v5 = vlaneseq  ;;  %s608_s0 = inlined_call_operand.vmem [shape: f32[2,1,8,24], index: 0, kind: input, shape index: {}]   ;;  %s609_s2 = inlined_call_operand.vmem [shape: f32[40,1], index: 2, kind: input, shape index: {}]   ;;  %s610_s1 = inlined_call_operand.vmem [shape: f32[40,56], index: 1, kind: input, shape index: {}]   ;;  %s611_s4 = inlined_call_operand.vmem [shape: f32[8,1], index: 4, kind: input, shape index: {}]   ;;  %s612_s3 = inlined_call_operand.vmem [shape: f32[8,24], index: 3, kind: input, shape index: {}]   ;;  %s613_s5 = inlined_call_operand.vmem [shape: f32[1,1,8,32], index: 5, kind: output, shape index: {}]  }
   0x1   :  { %v492_v0 = vld [vmem:[%s608_s0] sm:$0xff]  ;;  %373 = vmatprep.subr.mxu0 %v443_v1  ;;  %411 = vmatprep.subr.mxu1 %v443_v1  ;;  %v21_v2 = vld [vmem:[%s608_s0 + $0x8] sm:$0xff]  ;;  %s446_s24 = smov 13   ;;  %s447_s25 = smov 12   ;;  %v78_v6 = vld [vmem:[%s609_s2 + $0x10] sm:$0xff]  ;;  %vm26_vm1 = vcmask 146432  }
   0x2   :  { %57 = vrot.lane.b32.xlu1 %v492_v0, %s444_s20  ;;  %64 = vrot.lane.b32.xlu0 %v492_v0, %s445_s21  ;;  %s448_s26 = smov 14   ;;  %s449_s27 = smov 124   ;;  %v76_v4 = vld [vmem:[%s609_s2] sm:$0xff]  ;;  %v77_v7 = vld [vmem:[%s609_s2 + $0x8] sm:$0xff]  ;;  %v525_v8 = vand.u32 127, %v218_v5  ;;  %vm106_vm2 = vcmask 457728  }
   0x3   :  { %s450_s28 = smov 15   ;;  %s451_s29 = smov 125   ;;  %387 = vmatprep.mubr.msk.f32.mxu0 %vm452_vm0, %v443_v1  ;;  %396 = vmatprep.mubr.msk.f32.mxu1 %vm452_vm0, %v443_v1  ;;  %v71_v28 = vld [vmem:[%s610_s1] sm:$0xff]  ;;  %v74_v29 = vld [vmem:[%s610_s1 + $0x18] sm:$0xff]  ;;  %v72_v31 = vld [vmem:[%s610_s1 + $0x8] sm:$0xff]  ;;  %v232_v39 = vshrl.u32 %v218_v5, 7 }
   0x4   :  { %s453_s0 = smov 16   ;;  %s454_s30 = smov 126   ;;  %441 = vset.pattern.permute.xlu1 %v457_v3  ;;  %442 = vset.pattern.permute.xlu0 %v457_v3  ;;  %v75_v32 = vld [vmem:[%s610_s1 + $0x20] sm:$0xff]  ;;  %v73_v33 = vld [vmem:[%s610_s1 + $0x10] sm:$0xff]  ;;  %vm241_vm7 = vcmask 130048   ;;  %vm261_vm8 = vcmask 195584  }
   0x5   :  { %s455_s6 = smov 17   ;;  %s456_s7 = smov 127   ;;  %v233_v44 = vsub.s32 0, %v232_v39  ;;  %v80_v63 = vld [vmem:[%s609_s2 + $0x20] sm:$0xff]  ;;  %vm345_vm9 = vcmask 261120  }
   0x6   :  { %60 = vrot.lane.b32.xlu1 %v21_v2, %s446_s24  ;;  %67 = vrot.lane.b32.xlu0 %v21_v2, %s447_s25  ;;  %s458_s10 = smov 18  }
   0xa   :  { %53 = vrot.lane.b32.xlu1 %v21_v2, %s448_s26  ;;  %50 = vrot.lane.b32.xlu0 %v492_v0, %s449_s27 }
   0xe   :  { %46 = vrot.lane.b32.xlu1 %v21_v2, %s450_s28  ;;  %43 = vrot.lane.b32.xlu0 %v492_v0, %s451_s29 }
  0x12   :  { %39 = vrot.lane.b32.xlu1 %v21_v2, %s453_s0  ;;  %36 = vrot.lane.b32.xlu0 %v492_v0, %s454_s30 }
  0x16   :  { %32 = vrot.lane.b32.xlu1 %v21_v2, %s455_s6  ;;  %29 = vrot.lane.b32.xlu0 %v492_v0, %s456_s7 }
  0x1a   :  { %23 = vrot.lane.b32.xlu0 %v21_v2, %s458_s10  ;;  %83 = vperm.xlu1 %441, %v76_v4   ;;  %v255_v2 = vld [vmem:[%s611_s4] sm:$0xff] }
  0x1e   :  { %93 = vperm.xlu1 %441, %v78_v6   ;;  %88 = vperm.xlu0 %442, %v77_v7  }
  0x22   :  { %220 = vrot.lane.b32.xlu1 %v525_v8, %s458_s10 }
  0x74   :  { %v58_v9 = vpop.permute.xlu1 %57  ;;  %v65_v10 = vpop.permute.xlu0 %64 }
  0x78   :  { %v61_v11 = vpop.permute.xlu1 %60  ;;  %v68_v12 = vpop.permute.xlu0 %67 }
  0x79   :  { %v70_v13 = vsel %vm26_vm1, %v65_v10, %v68_v12  ;;  %v63_v14 = vsel %vm26_vm1, %v58_v9, %v61_v11  ;;  %v254_v9 = vld [vmem:[%s612_s3] sm:$0xff] }
  0x7a   :  { %374 = vmatpush3.msra.mxu0 %v70_v13  ;;  %418 = vmatpush3.msra.mxu1 %v70_v13 }
  0x7b   :  { %375 = vmatprep.subr.mxu0 %v443_v1  ;;  %412 = vmatprep.subr.mxu1 %v443_v1 }
  0x7c   :  { %v54_v15 = vpop.permute.xlu1 %53  ;;  %376 = vmatpush3.msra.mxu0 %v63_v14  ;;  %419 = vmatpush3.msra.mxu1 %v63_v14  ;;  %v51_v16 = vpop.permute.xlu0 %50 }
  0x7d   :  { %377 = vmatprep.subr.mxu0 %v443_v1  ;;  %413 = vmatprep.subr.mxu1 %v443_v1  ;;  %v56_v17 = vsel %vm26_vm1, %v51_v16, %v54_v15 }
  0x7e   :  { %378 = vmatpush3.msra.mxu0 %v56_v17  ;;  %420 = vmatpush3.msra.mxu1 %v56_v17 }
  0x7f   :  { %379 = vmatprep.subr.mxu0 %v443_v1  ;;  %414 = vmatprep.subr.mxu1 %v443_v1 }
  0x80   :  { %v47_v18 = vpop.permute.xlu1 %46  ;;  %v44_v19 = vpop.permute.xlu0 %43 }
  0x81   :  { %v49_v20 = vsel %vm26_vm1, %v44_v19, %v47_v18 }
  0x82   :  { %380 = vmatpush3.msra.mxu0 %v49_v20  ;;  %421 = vmatpush3.msra.mxu1 %v49_v20 }
  0x83   :  { %381 = vmatprep.subr.mxu0 %v443_v1  ;;  %415 = vmatprep.subr.mxu1 %v443_v1 }
  0x84   :  { %v40_v21 = vpop.permute.xlu1 %39  ;;  %v37_v22 = vpop.permute.xlu0 %36 }
  0x85   :  { %v42_v23 = vsel %vm26_vm1, %v37_v22, %v40_v21 }
  0x86   :  { %382 = vmatpush3.msra.mxu0 %v42_v23  ;;  %422 = vmatpush3.msra.mxu1 %v42_v23 }
  0x87   :  { %383 = vmatprep.subr.mxu0 %v443_v1  ;;  %416 = vmatprep.subr.mxu1 %v443_v1 }
  0x88   :  { %v33_v24 = vpop.permute.xlu1 %32  ;;  %v30_v25 = vpop.permute.xlu0 %29 }
  0x89   :  { %v35_v26 = vsel %vm26_vm1, %v30_v25, %v33_v24 }
  0x8a   :  { %384 = vmatpush3.msra.mxu0 %v35_v26  ;;  %423 = vmatpush3.msra.mxu1 %v35_v26 }
  0x8b   :  { %385 = vmatprep.subr.mxu0 %v443_v1  ;;  %417 = vmatprep.subr.mxu1 %v443_v1 }
  0x8c   :  { %v24_v27 = vpop.permute.xlu0 %23 }
  0x8d   :  { %v27_v30 = vsel %vm26_vm1, %v492_v0, %v24_v27  ;;  %v79_v0 = vld [vmem:[%s609_s2 + $0x18] sm:$0xff] }
  0x8e   :  { %386 = vmatpush3.msra.mxu0 %v27_v30  ;;  %424 = vmatpush3.msra.mxu1 %v27_v30 }
  0x8f   :  { %388 = vmatmul.mubr.msk.f32.vlgmr.msra.gmra.mxu0 %vm106_vm2, %v71_v28  ;;  %397 = vmatmul.mubr.msk.f32.vlgmr.msra.gmra.mxu1 %vm106_vm2, %v74_v29 }
  0x90   :  { %390 = vmatprep.mubr.msk.f32.mxu0 %vm452_vm0, %v443_v1  ;;  %399 = vmatprep.mubr.msk.f32.mxu1 %vm452_vm0, %v443_v1 }
  0x91   :  { %402 = vmatprep.subr.mxu1 %v443_v1 }
  0x93   :  { %391 = vmatmul.mubr.msk.f32.gmra.mxu0 %vm106_vm2, %v72_v31  ;;  %400 = vmatmul.mubr.msk.f32.gmra.mxu1 %vm106_vm2, %v75_v32 }
  0x94   :  { %393 = vmatprep.mubr.msk.f32.mxu0 %vm452_vm0, %v443_v1  ;;  %408 = vmatprep.mubr.msk.f32.mxu1 %vm452_vm0, %v443_v1 }
  0x95   :  { %v84_v34 = vpop.permute.xlu1 %83 }
  0x97   :  { %394 = vmatmul.mubr.msk.f32.gmra.mxu0 %vm106_vm2, %v73_v33 }
  0x99   :  { %v94_v35 = vpop.permute.xlu1 %93  ;;  %v89_v42 = vpop.permute.xlu0 %88 }
  0x9d   :  { %v221_v36 = vpop.permute.xlu1 %220 }
  0x9e   :  { %v222_v37 = vsel %vm26_vm1, %v525_v8, %v221_v36 }
  0x9f   :  { %v226_v38 = vadd.s32 4294967295, %v222_v37 }
  0xa1   :  { %vm227_vm3 = vcmp.ge.s32.totalorder %v226_v38, 0  ;;  %vm228_vm4 = vcmp.lt.s32.totalorder %v226_v38, 16 }
  0xa2   :  { %vm229_vm5 = vmand %vm227_vm3, %vm228_vm4 }
  0xa3   :  { %v230_v47 = vsel %vm229_vm5, 1, %v457_v3 }
  0xa4   :  { %v234_v51 = vrot.slane %v230_v47, %v233_v44 }
  0xa6   :  { %vm235_vm6 = vcmp.eq.s32.totalorder %v234_v51, 1 }
 0x14f   :  { %v188_v40 = vpop.f32.mrf.mxu0  ;;  %v203_v57 = vpop.f32.mrf.mxu1 }
 0x150   :  { %v189_v45 = vadd.f32 %v188_v40, %v84_v34 }
 0x151   :  { %v389_v41 = vpop.f32.mrf.mxu0  ;;  %v398_v59 = vpop.f32.mrf.mxu1 }
 0x152   :  { %v212_v52 = vmax.f32 %v189_v45, 0.0 }
 0x153   :  { %v193_v43 = vpop.f32.mrf.mxu0  ;;  %v208_v61 = vpop.f32.mrf.mxu1 }
 0x154   :  { %v194_v46 = vadd.f32 %v193_v43, %v89_v42 }
 0x155   :  { %v392_v48 = vpop.f32.mrf.mxu0  ;;  %v401_v62 = vpop.f32.mrf.mxu1 }
 0x156   :  { %v213_v49 = vmax.f32 %v194_v46, 0.0 }
 0x157   :  { %v198_v50 = vpop.f32.mrf.mxu0 }
 0x158   :  { %v199_v53 = vadd.f32 %v198_v50, %v94_v35  ;;  %v214_v55 = vadd.f32 %v213_v49, %v212_v52 }
 0x159   :  { %v395_v54 = vpop.f32.mrf.mxu0 }
 0x15a   :  { %v215_v56 = vmax.f32 %v199_v53, 0.0 }
 0x15c   :  { %v216_v58 = vadd.f32 %v215_v56, %v214_v55 }
 0x15e   :  { %v236_v60 = vsel %vm235_vm6, %v216_v58, 0.0 }
 0x15f   :  { %250 = vrot.lane.b32.xlu1 %v236_v60, %s449_s27  ;;  %238 = vrot.lane.b32.xlu0 %v236_v60, %s454_s30 }
 0x163   :  { %246 = vrot.lane.b32.xlu1 %v236_v60, %s451_s29  ;;  %243 = vrot.lane.b32.xlu0 %v236_v60, %s456_s7 }
 0x167   :  { %103 = vperm.xlu1 %441, %v80_v63   ;;  %98 = vperm.xlu0 %442, %v79_v0  }
 0x16b   :  { %258 = vperm.xlu0 %442, %v255_v2  }
 0x1d1   :  { %v251_v3 = vpop.permute.xlu1 %250  ;;  %v239_v4 = vpop.permute.xlu0 %238 }
 0x1d2   :  { %v253_v5 = vsel %vm241_vm7, %v239_v4, %v251_v3  ;;  %v242_v10 = vsel %vm241_vm7, %v236_v60, %v239_v4 }
 0x1d3   :  { %403 = vmatpush3.msra.mxu1 %v253_v5 }
 0x1d4   :  { %404 = vmatprep.subr.mxu1 %v443_v1 }
 0x1d5   :  { %v247_v6 = vpop.permute.xlu1 %246  ;;  %v244_v7 = vpop.permute.xlu0 %243 }
 0x1d6   :  { %v249_v8 = vsel %vm241_vm7, %v244_v7, %v247_v6 }
 0x1d7   :  { %405 = vmatpush3.msra.mxu1 %v249_v8 }
 0x1d8   :  { %406 = vmatprep.subr.mxu1 %v443_v1 }
 0x1d9   :  { %407 = vmatpush3.msra.mxu1 %v242_v10 }
 0x1da   :  { %409 = vmatmul.mubr.msk.f32.vlgmr.msra.gmra.mxu1 %vm261_vm8, %v254_v9 }
 0x1e2   :  { %v104_v11 = vpop.permute.xlu1 %103  ;;  %v99_v12 = vpop.permute.xlu0 %98 }
 0x1e3   :  { %v209_v13 = vadd.f32 %v208_v61, %v104_v11  ;;  %v204_v14 = vadd.f32 %v203_v57, %v99_v12 }
 0x1e5   :  { %v217_v15 = vadd.f32 %v209_v13, %v204_v14 }
 0x1e6   :  { %v259_v16 = vpop.permute.xlu0 %258 }
 0x1e7   :  { %339 = vrot.lane.b32.xlu0 %v217_v15, %s451_s29  ;;  %336 = vrot.lane.b32.xlu1 %v217_v15, %s456_s7 }
 0x259   :  { %v337_v17 = vpop.permute.xlu1 %336  ;;  %v340_v18 = vpop.permute.xlu0 %339 }
 0x25a   :  { %v342_v21 = vsel %vm241_vm7, %v337_v17, %v340_v18 }
 0x29a   :  { %v331_v19 = vpop.f32.mrf.mxu1 }
 0x29b   :  { %v332_v20 = vadd.f32 %v331_v19, %v259_v16 }
 0x29c   :  { %v410_v22 = vpop.f32.mrf.mxu1 }
 0x29d   :  { %v343_v1 = vadd.f32 %v342_v21, %v332_v20 }
 0x29f   :  { %v344_v23 = vmax.f32 %v343_v1, 0.0 }
 0x2a1   :  { %346 = vst.msk [vmem:[%s613_s5] sm:$0xff] %vm345_vm9, %v344_v23 }

</bundles_post_ra>
